<compile_context>
chip_gen: v7x
topology: tpu7x:2x2x1
jax: 0.10.0
libtpu: 0.0.40
codegen_flags: <defaults>
</compile_context>

<pallas_src>
import math
import functools

import jax
import jax.numpy as jnp
from jax.experimental import pallas as pl
from jax.experimental.pallas import tpu as pltpu


def _window_bounds(l, num_levels):
    """Static per-level pooling windows, mirroring the torch arithmetic.

    Returns [(kernel_size, [(start, end), ...]) per level], with windows
    clamped to the valid range [0, l).
    """
    levels = []
    for i in range(num_levels):
        level = i + 1
        ks = math.ceil(l / level)
        stride = math.ceil(l / level)
        pad = math.floor((ks * level - l + 1) / 2)
        # torch F.max_pool1d / avg_pool1d reject pad > ks/2; this also
        # guarantees every clamped window below is non-empty.
        assert 2 * pad <= ks, (
            f"SPP level {level}: padding {pad} > kernel_size/2 ({ks}/2); "
            "torch rejects this configuration")
        wins = []
        for j in range(level):
            s = j * stride - pad
            e = s + ks
            # Clamp: for max_pool padded elems are -inf (ignored); for avg_pool
            # they are zeros (sum unaffected, still divide by full ks).
            wins.append((max(s, 0), min(e, l)))
        levels.append((ks, wins))
    return levels


def _spp_pool_kernel(x_ref, o_ref, *, levels, spad, pool_type):
    # x_ref block: (TR, L) rows of flattened (n, c); o_ref block: (TR, spad).
    x = x_ref[...]                      # native dtype — no f32 widen for max
    tr = x.shape[0]
    cols = []
    for ks, wins in levels:
        for (s, e) in wins:             # static, non-empty lane slices
            seg = x[:, s:e]
            if pool_type == 'max_pool':
                cols.append(jnp.max(seg, axis=1, keepdims=True))
            else:
                # f32 accumulation + 1/ks scale matches torch avg_pool1d
                # (count_include_pad=True) exactly.
                acc = jnp.sum(seg.astype(jnp.float32), axis=1, keepdims=True)
                cols.append((acc * (1.0 / ks)).astype(x.dtype))
    out = jnp.concatenate(cols, axis=1)
    s_total = out.shape[1]
    if spad > s_total:
        out = jnp.concatenate(
            [out, jnp.zeros((tr, spad - s_total), out.dtype)], axis=1)
    o_ref[...] = out.astype(o_ref.dtype)   # single block-wide store


def spp_layer(x, num_levels, pool_type='max_pool'):
    n, c, l = x.shape
    levels = _window_bounds(l, num_levels)
    s_total = num_levels * (num_levels + 1) // 2
    assert s_total == sum(len(w) for _, w in levels)

    # Output lane width: unmasked lane-dense 128-wide store only when the
    # padded writeback is a small fraction of the input read; for small L the
    # exact-width (masked) store keeps HBM write traffic tiny.
    s_pad128 = pl.cdiv(s_total, 128) * 128
    spad = s_pad128 if l >= 4 * s_pad128 else s_total

    # Pack rows sublane-dense: row index = (n, c), L on the lane axis (a view,
    # no copy — the wrapper zero-pad of v2 is gone).
    nr = n * c
    x2d = x.reshape(nr, l)

    # --- Row-tile sizing: byte budget, not a fixed row cap --------------------
    itemsize = jnp.dtype(x.dtype).itemsize
    per_row_bytes = max(1, (l + spad) * itemsize)
    target_bytes = 4 << 20                       # ~4 MiB per step (in + out)
    tr = max(8, (target_bytes // per_row_bytes) // 8 * 8)
    nr_up = pl.cdiv(nr, 8) * 8
    tr = min(tr, nr_up)
    if nr > 8:
        # Give the "parallel" grid axis >= 2 steps so v7x's two TensorCores
        # both get work (no-op on v5e/v6e).
        tr = min(tr, max(8, pl.cdiv(pl.cdiv(nr, 2), 8) * 8))
    grid = (pl.cdiv(nr, tr),)

    # --- VMEM budget -----------------------------------------------------------
    # 2x (double-buffer) input + output blocks, plus headroom for the avg
    # path's in-kernel f32 temporaries.  >= 32 MiB overrides v5e's 16 MiB
    # default scoped limit; <= 48 MiB stays inside v7x's 64 MiB physical VMEM.
    block_bytes = tr * (l + spad) * itemsize
    vmem_need = 2 * block_bytes + 4 * tr * (l + spad) + (4 << 20)
    vmem_limit = int(min(max(vmem_need, 32 << 20), 48 << 20))

    kernel = functools.partial(
        _spp_pool_kernel, levels=levels, spad=spad, pool_type=pool_type)

    y = pl.pallas_call(
        kernel,
        out_shape=jax.ShapeDtypeStruct((nr, spad), x.dtype),
        grid=grid,
        in_specs=[pl.BlockSpec((tr, l), lambda i: (i, 0))],
        out_specs=pl.BlockSpec((tr, spad), lambda i: (i, 0)),
        compiler_params=pltpu.CompilerParams(
            dimension_semantics=("parallel",),
            vmem_limit_bytes=vmem_limit),
    )(x2d)

    # Torch-order flatten + concat, done in plain XLA outside the kernel:
    # for each level, (N, C, level).view(N, -1), then cat along dim 1.
    y = y.reshape(n, c, spad)
    parts, off = [], 0
    for i in range(num_levels):
        level = i + 1
        parts.append(y[:, :, off:off + level].reshape(n, c * level))
        off += level
    return jnp.concatenate(parts, axis=1)


def spp_layer_ref(x, num_levels, pool_type='max_pool'):
    """Pure-JAX reference mirroring the torch forward (for verification)."""
    n, c, l = x.shape
    outs = []
    for ks, wins in _window_bounds(l, num_levels):
        cols = []
        for (s, e) in wins:
            seg = x[:, :, s:e]
            if pool_type == 'max_pool':
                cols.append(jnp.max(seg, axis=2, keepdims=True))
            else:
                cols.append(jnp.sum(seg, axis=2, keepdims=True) / float(ks))
        pooled = jnp.concatenate(cols, axis=2)        # (N, C, level)
        outs.append(pooled.reshape(n, -1))
    return jnp.concatenate(outs, axis=1)


if __name__ == "__main__":
    key = jax.random.PRNGKey(0)

    # Case 1: small shape consistent with the module (batch=2, channels=4, L=16).
    N, C, L = 2, 4, 16
    NUM_LEVELS = 3
    x = jax.random.normal(key, (N, C, L), dtype=jnp.float32)
    total = C * NUM_LEVELS * (NUM_LEVELS + 1) // 2

    out_max = jax.block_until_ready(spp_layer(x, NUM_LEVELS, 'max_pool'))
    ref_max = spp_layer_ref(x, NUM_LEVELS, 'max_pool')
    assert out_max.shape == (N, total), out_max.shape
    assert jnp.allclose(out_max, ref_max, atol=1e-5, rtol=1e-5), "max_pool mismatch"

    out_avg = jax.block_until_ready(spp_layer(x, NUM_LEVELS, 'avg_pool'))
    ref_avg = spp_layer_ref(x, NUM_LEVELS, 'avg_pool')
    assert out_avg.shape == (N, total), out_avg.shape
    assert jnp.allclose(out_avg, ref_avg, atol=1e-5, rtol=1e-5), "avg_pool mismatch"

    # Case 2: nr not a multiple of the row tile -> exercises the multi-step grid
    # and the partial last block (no wrapper-side padding copy anymore).
    key2 = jax.random.PRNGKey(0)
    N2, C2, L2, LV2 = 3, 5, 40, 4
    x2 = jax.random.normal(key2, (N2, C2, L2), dtype=jnp.float32)
    tot2 = C2 * LV2 * (LV2 + 1) // 2
    o2m = jax.block_until_ready(spp_layer(x2, LV2, 'max_pool'))
    r2m = spp_layer_ref(x2, LV2, 'max_pool')
    assert o2m.shape == (N2, tot2)
    assert jnp.allclose(o2m, r2m, atol=1e-5, rtol=1e-5), "max_pool (case 2) mismatch"
    o2a = jax.block_until_ready(spp_layer(x2, LV2, 'avg_pool'))
    r2a = spp_layer_ref(x2, LV2, 'avg_pool')
    assert jnp.allclose(o2a, r2a, atol=1e-5, rtol=1e-5), "avg_pool (case 2) mismatch"

    print("KERNEL_OK")
</pallas_src>

<mosaic_0001>
module attributes {stable_mosaic.version = 11 : i64} {
  func.func @_spp_pool_kernel(%arg0: i32, %arg1: memref<8x16xf32, #tpu.memory_space<vmem>>, %arg2: memref<8x6xf32, #tpu.memory_space<vmem>>) attributes {dimension_semantics = [#tpu.dimension_semantics<parallel>], iteration_bounds = array<i64: 1>, scalar_prefetch = 0 : i64, scratch_operands = 0 : i64, tpu.core_type = #tpu.core_type<tc>, window_params = [{transform_indices = @transform_0, window_bounds = array<i64: 8, 16>}, {transform_indices = @transform_1, window_bounds = array<i64: 8, 6>}]} {
    %c0 = arith.constant 0 : index
    %c0_0 = arith.constant 0 : index
    %0 = vector.load %arg1[%c0, %c0_0] : memref<8x16xf32, #tpu.memory_space<vmem>>, vector<8x16xf32>
    %cst = arith.constant dense<0xFF800000> : vector<8xf32>
    %1 = vector.multi_reduction <maximumf>, %0, %cst [1] : vector<8x16xf32> to vector<8xf32>
    %2 = vector.shape_cast %1 : vector<8xf32> to vector<8x1xf32>
    %3 = vector.extract_strided_slice %0 {offsets = [0, 0], sizes = [8, 8], strides = [1, 1]} : vector<8x16xf32> to vector<8x8xf32>
    %cst_1 = arith.constant dense<0xFF800000> : vector<8xf32>
    %4 = vector.multi_reduction <maximumf>, %3, %cst_1 [1] : vector<8x8xf32> to vector<8xf32>
    %5 = vector.shape_cast %4 : vector<8xf32> to vector<8x1xf32>
    %6 = vector.extract_strided_slice %0 {offsets = [0, 8], sizes = [8, 8], strides = [1, 1]} : vector<8x16xf32> to vector<8x8xf32>
    %cst_2 = arith.constant dense<0xFF800000> : vector<8xf32>
    %7 = vector.multi_reduction <maximumf>, %6, %cst_2 [1] : vector<8x8xf32> to vector<8xf32>
    %8 = vector.shape_cast %7 : vector<8xf32> to vector<8x1xf32>
    %9 = vector.extract_strided_slice %0 {offsets = [0, 0], sizes = [8, 5], strides = [1, 1]} : vector<8x16xf32> to vector<8x5xf32>
    %cst_3 = arith.constant dense<0xFF800000> : vector<8xf32>
    %10 = vector.multi_reduction <maximumf>, %9, %cst_3 [1] : vector<8x5xf32> to vector<8xf32>
    %11 = vector.shape_cast %10 : vector<8xf32> to vector<8x1xf32>
    %12 = vector.extract_strided_slice %0 {offsets = [0, 5], sizes = [8, 6], strides = [1, 1]} : vector<8x16xf32> to vector<8x6xf32>
    %cst_4 = arith.constant dense<0xFF800000> : vector<8xf32>
    %13 = vector.multi_reduction <maximumf>, %12, %cst_4 [1] : vector<8x6xf32> to vector<8xf32>
    %14 = vector.shape_cast %13 : vector<8xf32> to vector<8x1xf32>
    %15 = vector.extract_strided_slice %0 {offsets = [0, 11], sizes = [8, 5], strides = [1, 1]} : vector<8x16xf32> to vector<8x5xf32>
    %cst_5 = arith.constant dense<0xFF800000> : vector<8xf32>
    %16 = vector.multi_reduction <maximumf>, %15, %cst_5 [1] : vector<8x5xf32> to vector<8xf32>
    %17 = vector.shape_cast %16 : vector<8xf32> to vector<8x1xf32>
    %18 = tpu.concatenate %2, %5, %8, %11, %14, %17 in 1 : vector<8x1xf32>, vector<8x1xf32>, vector<8x1xf32>, vector<8x1xf32>, vector<8x1xf32>, vector<8x1xf32> -> vector<8x6xf32>
    %c0_6 = arith.constant 0 : index
    %c0_7 = arith.constant 0 : index
    %19 = vector.load %arg2[%c0_6, %c0_7] : memref<8x6xf32, #tpu.memory_space<vmem>>, vector<8x6xf32>
    tpu.vector_store %arg2[%c0_6, %c0_7], %18 {strides = array<i32>} : memref<8x6xf32, #tpu.memory_space<vmem>>, vector<8x6xf32>,
    return
  }
  func.func @transform_0(%arg0: i32) -> (i32, i32) {
    %c0_i32 = arith.constant 0 : i32
    %c0_i32_0 = arith.constant 0 : i32
    return %arg0, %c0_i32 : i32, i32
  }
  func.func @transform_1(%arg0: i32) -> (i32, i32) {
    %c0_i32 = arith.constant 0 : i32
    %c0_i32_0 = arith.constant 0 : i32
    return %arg0, %c0_i32 : i32, i32
  }
}

</mosaic_0001>

<bundles_post_ra>
// kernel: tpu_custom_call.1
= control target key start
LH: loop header
LB: loop body
LE: loop exit
PB: predicated region body
PF: predicated region fallthrough
CT: control target
= control target key end

     0   :  { %6 = vsyncpa [#allocation3], 0  ;;  %s160_s0 = inlined_call_operand.hbm [shape: f32[8,16], index: 0, kind: input, shape index: {}]   ;;  %s161_s1 = inlined_call_operand.hbm [shape: f32[8,6], index: 1, kind: output, shape index: {}]  }
   0x1   :  { %7 = vsyncpa [#allocation4], 0  ;;  %s122_s6 = smov [#allocation2]   ;;  %s74_s10 = scalar_lea.hbm %s160_s0, 128 }
   0x2   :  { %s14_s7 = sshll.u32 %s122_s6, 4  ;;  %p75_p0 = scmp.ne.s32.totalorder %s160_s0, %s74_s10  ;;  %s15_s7 = int_to_ptr.vmem [resolvable:$true] %s14_s7 }
   0x3   :  { %p78_p1 = scmp.lt.u32.totalorder %s74_s10, %s160_s0 }
   0x5   :  { %p80_p2 = pnand %p78_p1, %p75_p0 }
   0x7   :  { %83 = shalt.err (!%p80_p2)
}
   0x8   :  { %s84_s15 = scalar_lea.vmem %s15_s7, 128  ;;  %p89_p4 = scmp.lt.s32.totalorder %s15_s7, %s15_s7 }
   0x9   :  { %p85_p3 = scmp.ne.s32.totalorder %s15_s7, %s84_s15  ;;  %p90_p5 = scmp.lt.s32.totalorder %s84_s15, %s84_s15 }
   0xb   :  { %p91_p6 = por %p90_p5, %p89_p4 }
   0xd   :  { %p92_p7 = pnand %p91_p6, %p85_p3 }
   0xf   :  { %95 = shalt.err (!%p92_p7)
}
  0x10   :  { %17 = dma.hbm_to_vmem [thread:$0]  %s160_s0, 128, %s15_s7, [#allocation3]  }
  0x11   :  { %118 = dma.done.wait [#allocation3], 128  }
  0x12   :  { %119 = vsyncadd [#allocation3], 4294967168  ;;  %vm22_vm0 = vcmask 130048   ;;  %vm30_vm1 = vcmask 130112   ;;  %v21_v0 = vld [vmem:[#allocation2] sm:$0xff]  ;;  %vm26_vm2 = vcmask 64512  }
  0x13   :  { %vm34_vm3 = vcmask 39936   ;;  %v23_v1 = vsel %vm22_vm0, %v21_v0, -inf  ;;  %v31_v2 = vsel %vm30_vm1, %v21_v0, -inf  ;;  %v27_v3 = vsel %vm26_vm2, %v21_v0, -inf  ;;  %s123_s0 = smov [#allocation5]  }
  0x14   :  { %24 = vmax.xlane.f32.xlu0 %v23_v1  ;;  %32 = vmax.xlane.f32.xlu1 %v31_v2  ;;  %v35_v4 = vsel %vm34_vm3, %v21_v0, -inf  ;;  %vm38_vm4 = vcmask 89128   ;;  %vm42_vm5 = vcmask 130136   ;;  %vm46_vm6 = vcmask 7168   ;;  %s63_s18 = sshll.u32 %s123_s0, 4  ;;  %s64_s18 = int_to_ptr.vmem [resolvable:$true] %s63_s18 }
  0x15   :  { %v39_v5 = vsel %vm38_vm4, %v21_v0, -inf  ;;  %v43_v6 = vsel %vm42_vm5, %v21_v0, -inf  ;;  %vm48_vm7 = vcmask 15360   ;;  %vm50_vm8 = vcmask 23552   ;;  %s96_s19 = scalar_lea.vmem %s64_s18, 128  ;;  %p101_p9 = scmp.lt.s32.totalorder %s64_s18, %s64_s18 }
  0x16   :  { %vm52_vm9 = vcmask 31744   ;;  %vm55_vm10 = vcmask 48128   ;;  %p97_p8 = scmp.ne.s32.totalorder %s64_s18, %s96_s19  ;;  %p102_p10 = scmp.lt.s32.totalorder %s96_s19, %s96_s19 }
  0x18   :  { %28 = vmax.xlane.f32.xlu0 %v27_v3  ;;  %36 = vmax.xlane.f32.xlu1 %v35_v4  ;;  %p103_p11 = por %p102_p10, %p101_p9 }
  0x1a   :  { %p104_p12 = pnand %p103_p11, %p97_p8 }
  0x1c   :  { %40 = vmax.xlane.f32.xlu0 %v39_v5  ;;  %44 = vmax.xlane.f32.xlu1 %v43_v6 }
  0xa1   :  { %v25_v7 = vpop.xlane.xlu0 %24  ;;  %v33_v8 = vpop.xlane.xlu1 %32 }
  0xa5   :  { %v29_v9 = vpop.xlane.xlu0 %28  ;;  %v37_v10 = vpop.xlane.xlu1 %36 }
  0xa6   :  { %v47_v11 = vsel %vm46_vm6, %v25_v7, %v29_v9 }
  0xa7   :  { %v49_v12 = vsel %vm48_vm7, %v47_v11, %v33_v8 }
  0xa8   :  { %v51_v13 = vsel %vm50_vm8, %v49_v12, %v37_v10 }
  0xa9   :  { %v41_v14 = vpop.xlane.xlu0 %40  ;;  %v45_v15 = vpop.xlane.xlu1 %44 }
  0xaa   :  { %v53_v16 = vsel %vm52_vm9, %v51_v13, %v41_v14 }
  0xab   :  { %v54_v17 = vsel %vm34_vm3, %v53_v16, %v45_v15 }
  0xac   :  { %56 = vst.msk [vmem:[#allocation5] sm:$0xff] %vm55_vm10, %v54_v17 }
  0xad   :  { %107 = shalt.err (!%p104_p12)
}
  0xae   :  { %s108_s22 = scalar_lea.hbm %s161_s1, 128 }
  0xaf   :  { %p109_p13 = scmp.ne.s32.totalorder %s161_s1, %s108_s22  ;;  %p112_p0 = scmp.lt.u32.totalorder %s108_s22, %s161_s1 }
  0xb1   :  { %p114_p1 = pnand %p112_p0, %p109_p13 }
  0xb3   :  { %117 = shalt.err (!%p114_p1)
}
  0xb4   :  { %66 = dma.vmem_to_hbm [thread:$0]  %s64_s18, 128, %s161_s1, [#allocation4]  }
  0xb5   :  { %120 = dma.done.wait [#allocation4], 128  }
  0xb6   :  { %121 = vsyncadd [#allocation4], 4294967168 }
  0xb7   :  { %70 = vsyncpa [#allocation3], 1 }
  0xb8   :  { %71 = vsyncpa [#allocation4], 1 }

</bundles_post_ra>
